<compile_context>
chip_gen: v5e
topology: v5e:2x2
jax: 0.10.0
libtpu: 0.0.40
codegen_flags: <defaults>
</compile_context>

<pallas_src>
import math

import jax
import jax.numpy as jnp
from jax import lax
from jax.experimental import pallas as pl
from jax.experimental.pallas import tpu as pltpu  # noqa: F401  (TPU backend / future knobs)


# ----------------------------------------------------------------------------
# Single fused kernel (no grid; every operand is a whole-array VMEM block).
# ----------------------------------------------------------------------------
def make_st_block_kernel(T, Nu, Nc, H, O):
    TH = T * H
    inv_n_u = 1.0 / Nu
    inv_n_c = 1.0 / Nc
    inv_sqrt_h = 1.0 / math.sqrt(H)
    inv_t = 1.0 / T

    def kernel(x_ref,      # [T*(Nu+Nc), T*2F]  bf16  blockdiag_t(x_bd)
               w_ref,      # [T*2F, 2*T*H]      bf16  [blkdiag_t(W_u) | blkdiag_t(W_c)]
               a_ref,      # [Nu+Nc, T*(Nu+Nc)] bf16  [hstack_t(A_u); hstack_t(A_c)]
               bias_ref,   # [Nu+Nc, 2*T*H]     f32   first-layer biases (garbage lanes 0)
               wqk_ref,    # [H, 2H]            f32   [Wq | Wk]
               sb_ref,     # [2, T, 2*T*H + O]  f32   scale pattern + bo stacks (u, c)
               wo_ref,     # [2, 2*T*H, O]      bf16  zero-padded vstack_t(Wo) (u, c)
               out_ref):   # [Nu+Nc, O]         f32
        f32, bf16 = jnp.float32, jnp.bfloat16

        # ---- Stage 1: every (t, node-type, relation) feature projection, one dot.
        p_all = jnp.dot(x_ref[...], w_ref[...], preferred_element_type=f32)     # [T*N, 2TH]

        # ---- Stage 2: every (t, node-type) adjacency aggregation, one dot.
        h_all = jnp.dot(a_ref[...], p_all.astype(bf16),
                        preferred_element_type=f32)                             # [N, 2TH]
        h_all = jnp.maximum(h_all + bias_ref[...], 0.0)                         # ReLU (f32)

        # ---- Node-pooled per-timestep contexts (sublane reduce, lane-block gather).
        colsum_u = jnp.sum(h_all[:Nu, :], axis=0, keepdims=True) * inv_n_u      # [1, 2TH]
        colsum_c = jnp.sum(h_all[Nu:, :], axis=0, keepdims=True) * inv_n_c
        ctx_u = jnp.concatenate(
            [colsum_u[:, t * H:(t + 1) * H] for t in range(T)], axis=0)         # [T, H]
        ctx_c = jnp.concatenate(
            [colsum_c[:, TH + t * H: TH + (t + 1) * H] for t in range(T)], axis=0)

        wqk = wqk_ref[...]

        def temporal_weights(ctx):
            qk = jnp.dot(ctx, wqk, preferred_element_type=f32)                  # [T, 2H]
            q, k = qk[:, :H], qk[:, H:]
            s = lax.dot_general(q, k, dimension_numbers=(((1,), (1,)), ((), ())),
                                preferred_element_type=f32) * inv_sqrt_h        # [T, T]
            s = s - jnp.max(s, axis=-1, keepdims=True)
            e = jnp.exp(s)
            alpha = e / jnp.sum(e, axis=-1, keepdims=True)   # exact divide (ref parity)
            return jnp.sum(alpha, axis=0, keepdims=True) * inv_t                # [1, T]

        # Attention wiring matches the module: u-embedding pooled with weights built
        # from the c contexts, and vice versa.
        wt_u = temporal_weights(ctx_c)
        wt_c = temporal_weights(ctx_u)

        # ---- Stage 3: per-lane temporal scale row + pooled output bias, one tiny dot.
        row_u = jnp.dot(wt_u, sb_ref[0], preferred_element_type=f32)            # [1, 2TH+O]
        row_c = jnp.dot(wt_c, sb_ref[1], preferred_element_type=f32)
        scale_u, biasv_u = row_u[:, :2 * TH], row_u[:, 2 * TH:]
        scale_c, biasv_c = row_c[:, :2 * TH], row_c[:, 2 * TH:]

        # ---- Stage 4: output linear fused with temporal pooling (one dot per type).
        # Zero rows in wo_ref kill the garbage lanes of h_all exactly.
        emb_u = jnp.dot((h_all[:Nu, :] * scale_u).astype(bf16), wo_ref[0],
                        preferred_element_type=f32) + biasv_u                   # [Nu, O]
        emb_c = jnp.dot((h_all[Nu:, :] * scale_c).astype(bf16), wo_ref[1],
                        preferred_element_type=f32) + biasv_c                   # [Nc, O]

        # Two direct row-sliced stores (no output-slab concatenate).
        out_ref[:Nu, :] = emb_u
        out_ref[Nu:, :] = emb_c

    return kernel


# ----------------------------------------------------------------------------
# ST_Block forward: host-side slab packing + one pallas_call + unpack.
# ----------------------------------------------------------------------------
def st_block_forward(params, w_uu_seq, w_uc_seq, w_cc_seq, X_U, X_C):
    f32, bf16 = jnp.float32, jnp.bfloat16
    T, Nu, _ = w_uu_seq.shape
    Nc = w_cc_seq.shape[1]
    F = X_U.shape[1]
    H = params["W_uu"].shape[2]
    O = params["Wo_u"].shape[2]
    N = Nu + Nc
    TH = T * H

    # ---- Stage-1 LHS: block-diag over t of the shared block-diag feature matrix.
    x_bd = jnp.zeros((N, 2 * F), f32)
    x_bd = x_bd.at[:Nu, :F].set(X_U).at[Nu:, F:].set(X_C)                        # [N, 2F]
    x_bd_rep = jnp.zeros((T * N, T * 2 * F), f32)
    for t in range(T):
        x_bd_rep = x_bd_rep.at[t * N:(t + 1) * N, t * 2 * F:(t + 1) * 2 * F].set(x_bd)

    # ---- Stage-1 RHS: [blockdiag_t(W_u_stack) | blockdiag_t(W_c_stack)], 2TH lanes.
    w_all = jnp.zeros((T * 2 * F, 2 * TH), f32)
    for t in range(T):
        wu_t = jnp.concatenate([params["W_uu"][t], params["W_uc"][t]], axis=0)   # [2F, H]
        wc_t = jnp.concatenate([params["W_cu"][t], params["W_cc"][t]], axis=0)   # [2F, H] (c-side reordered)
        w_all = w_all.at[t * 2 * F:(t + 1) * 2 * F, t * H:(t + 1) * H].set(wu_t)
        w_all = w_all.at[t * 2 * F:(t + 1) * 2 * F, TH + t * H:TH + (t + 1) * H].set(wc_t)

    # ---- Stage-2 LHS: [hstack_t([w_uu|w_uc]); hstack_t([w_uc^T|w_cc])].
    a_both = jnp.zeros((N, T * N), f32)
    for t in range(T):
        a_u_t = jnp.concatenate([w_uu_seq[t], w_uc_seq[t]], axis=1)              # [Nu, N]
        a_c_t = jnp.concatenate([w_uc_seq[t].T, w_cc_seq[t]], axis=1)            # [Nc, N]
        a_both = a_both.at[:Nu, t * N:(t + 1) * N].set(a_u_t)
        a_both = a_both.at[Nu:, t * N:(t + 1) * N].set(a_c_t)

    # ---- Stage-2 bias slab (garbage lanes stay 0; they never reach the output).
    bias_all = jnp.zeros((N, 2 * TH), f32)
    for t in range(T):
        bias_all = bias_all.at[:Nu, t * H:(t + 1) * H].set(
            jnp.broadcast_to(params["b_u"][t], (Nu, H)))
        bias_all = bias_all.at[Nu:, TH + t * H:TH + (t + 1) * H].set(
            jnp.broadcast_to(params["b_c"][t], (Nc, H)))

    # ---- Fused attention projection [Wq | Wk].
    wqk = jnp.concatenate([params["att_Wq"], params["att_Wk"]], axis=1)          # [H, 2H]

    # ---- Scale-pattern + pooled-output-bias slabs (one per node type).
    sb = jnp.zeros((2, T, 2 * TH + O), f32)
    for t in range(T):
        sb = sb.at[0, t, t * H:(t + 1) * H].set(1.0)
        sb = sb.at[1, t, TH + t * H:TH + (t + 1) * H].set(1.0)
    sb = sb.at[0, :, 2 * TH:].set(params["bo_u"][:, 0, :])
    sb = sb.at[1, :, 2 * TH:].set(params["bo_c"][:, 0, :])

    # ---- Zero-padded vstack_t(Wo) slabs (zeros kill the garbage lanes of h_all).
    wo_pad = jnp.zeros((2, 2 * TH, O), f32)
    for t in range(T):
        wo_pad = wo_pad.at[0, t * H:(t + 1) * H, :].set(params["Wo_u"][t])
        wo_pad = wo_pad.at[1, TH + t * H:TH + (t + 1) * H, :].set(params["Wo_c"][t])

    kernel = make_st_block_kernel(T, Nu, Nc, H, O)
    out = pl.pallas_call(
        kernel,
        out_shape=jax.ShapeDtypeStruct((N, O), f32),
        # No grid / BlockSpecs: every operand is tiny and becomes a whole-array
        # VMEM-resident block; the only HBM write is the [N, O] output.
    )(x_bd_rep.astype(bf16), w_all.astype(bf16), a_both.astype(bf16),
      bias_all, wqk, sb, wo_pad.astype(bf16))

    return out[:Nu], out[Nu:]


# ----------------------------------------------------------------------------
# Pure-JAX reference (original, unfused math) for a correctness check.
# ----------------------------------------------------------------------------
def reference_forward(params, w_uu_seq, w_uc_seq, w_cc_seq, X_U, X_C):
    T = w_uu_seq.shape[0]
    hu, hc, yu, yc = [], [], [], []
    for t in range(T):
        agg_uu = w_uu_seq[t] @ X_U
        agg_uc = w_uc_seq[t] @ X_C
        agg_cc = w_cc_seq[t] @ X_C
        agg_cu = w_uc_seq[t].T @ X_U
        h_u = jnp.maximum(agg_uu @ params["W_uu"][t] + agg_uc @ params["W_uc"][t]
                          + params["b_u"][t], 0.0)
        h_c = jnp.maximum(agg_cc @ params["W_cc"][t] + agg_cu @ params["W_cu"][t]
                          + params["b_c"][t], 0.0)
        hu.append(h_u); hc.append(h_c)
        yu.append(h_u @ params["Wo_u"][t] + params["bo_u"][t])
        yc.append(h_c @ params["Wo_c"][t] + params["bo_c"][t])
    hu, hc = jnp.stack(hu), jnp.stack(hc)
    yu, yc = jnp.stack(yu), jnp.stack(yc)

    def attn(ctx_seq, val_seq):
        T_, M, H = ctx_seq.shape
        ctx = ctx_seq.mean(axis=1)
        q = ctx @ params["att_Wq"]
        k = ctx @ params["att_Wk"]
        alpha = jax.nn.softmax(q @ k.T / math.sqrt(H), axis=-1)
        wt = alpha.sum(axis=0) / T_
        return jnp.einsum("t,tnf->nf", wt, val_seq)

    return attn(hc, yu), attn(hu, yc)


# ----------------------------------------------------------------------------
# Deterministic parameter init (nn.Linear-style uniform)
# ----------------------------------------------------------------------------
def init_params(key, F, H, O, T):
    ks = jax.random.split(key, 12)

    def lin(k, shape, fan_in):
        b = 1.0 / math.sqrt(fan_in)
        return jax.random.uniform(k, shape, jnp.float32, -b, b)

    return dict(
        W_uu=lin(ks[0], (T, F, H), F),
        W_uc=lin(ks[1], (T, F, H), F),
        W_cc=lin(ks[2], (T, F, H), F),
        W_cu=lin(ks[3], (T, F, H), F),
        b_u=lin(ks[4], (T, 1, H), F),
        b_c=lin(ks[5], (T, 1, H), F),
        Wo_u=lin(ks[6], (T, H, O), H),
        Wo_c=lin(ks[7], (T, H, O), H),
        bo_u=lin(ks[8], (T, 1, O), H),
        bo_c=lin(ks[9], (T, 1, O), H),
        att_Wq=lin(ks[10], (H, H), H),
        att_Wk=lin(ks[11], (H, H), H),
    )


if __name__ == "__main__":
    # small shapes: seq_len=4, N_U=16 user nodes, N_C=8 "dual" nodes,
    # input_dim=8, hidden_dim=16, output_dim=16  (2*T*H = 128 -> lane-dense stage-1/2 dots)
    T, Nu, Nc, F, H, O = 4, 16, 8, 8, 16, 16

    key = jax.random.PRNGKey(0)
    k1, k2, k3, k4, k5, kp = jax.random.split(key, 6)
    w_uu_seq = jax.random.uniform(k1, (T, Nu, Nu), jnp.float32)
    w_uc_seq = jax.random.uniform(k2, (T, Nu, Nc), jnp.float32)
    w_cc_seq = jax.random.uniform(k3, (T, Nc, Nc), jnp.float32)
    X_U = jax.random.normal(k4, (Nu, F), jnp.float32)
    X_C = jax.random.normal(k5, (Nc, F), jnp.float32)
    params = init_params(kp, F, H, O, T)

    node_embed_u, node_embed_c = jax.jit(st_block_forward)(
        params, w_uu_seq, w_uc_seq, w_cc_seq, X_U, X_C)
    jax.block_until_ready((node_embed_u, node_embed_c))

    ref_u, ref_c = reference_forward(params, w_uu_seq, w_uc_seq, w_cc_seq, X_U, X_C)
    assert node_embed_u.shape == (Nu, O) and node_embed_c.shape == (Nc, O)
    # Tolerance covers MXU bf16-operand passes and matmul re-association vs XLA f32.
    assert jnp.allclose(node_embed_u, ref_u, atol=2e-2, rtol=2e-2)
    assert jnp.allclose(node_embed_c, ref_c, atol=2e-2, rtol=2e-2)

    print("KERNEL_OK")
</pallas_src>

<mosaic_0001>
module attributes {stable_mosaic.version = 11 : i64} {
  func.func @kernel(%arg0: memref<96x64xbf16, #tpu.memory_space<vmem>>, %arg1: memref<64x128xbf16, #tpu.memory_space<vmem>>, %arg2: memref<24x96xbf16, #tpu.memory_space<vmem>>, %arg3: memref<24x128xf32, #tpu.memory_space<vmem>>, %arg4: memref<16x32xf32, #tpu.memory_space<vmem>>, %arg5: memref<2x4x144xf32, #tpu.memory_space<vmem>>, %arg6: memref<2x128x16xbf16, #tpu.memory_space<vmem>>, %arg7: memref<24x16xf32, #tpu.memory_space<vmem>>) attributes {dimension_semantics = [], scalar_prefetch = 0 : i64, scratch_operands = 0 : i64, tpu.core_type = #tpu.core_type<tc>} {
    %c0 = arith.constant 0 : index
    %c0_0 = arith.constant 0 : index
    %0 = vector.load %arg0[%c0, %c0_0] : memref<96x64xbf16, #tpu.memory_space<vmem>>, vector<96x64xbf16>
    %c0_1 = arith.constant 0 : index
    %c0_2 = arith.constant 0 : index
    %1 = vector.load %arg1[%c0_1, %c0_2] : memref<64x128xbf16, #tpu.memory_space<vmem>>, vector<64x128xbf16>
    %cst = arith.constant dense<0.000000e+00> : vector<96x128xf32>
    %2 = tpu.matmul %0, %1, %cst {dimension_numbers = #tpu.dot_dimension_numbers<[1], [0], [0], [1], [0, 0, 1, 1], [], []>} : vector<96x64xbf16>, vector<64x128xbf16>, vector<96x128xf32> -> vector<96x128xf32>
    %c0_3 = arith.constant 0 : index
    %c0_4 = arith.constant 0 : index
    %3 = vector.load %arg2[%c0_3, %c0_4] : memref<24x96xbf16, #tpu.memory_space<vmem>>, vector<24x96xbf16>
    %4 = arith.truncf %2 : vector<96x128xf32> to vector<96x128xbf16>
    %cst_5 = arith.constant dense<0.000000e+00> : vector<24x128xf32>
    %5 = tpu.matmul %3, %4, %cst_5 {dimension_numbers = #tpu.dot_dimension_numbers<[1], [0], [0], [1], [0, 0, 1, 1], [], []>} : vector<24x96xbf16>, vector<96x128xbf16>, vector<24x128xf32> -> vector<24x128xf32>
    %c0_6 = arith.constant 0 : index
    %c0_7 = arith.constant 0 : index
    %6 = vector.load %arg3[%c0_6, %c0_7] : memref<24x128xf32, #tpu.memory_space<vmem>>, vector<24x128xf32>
    %7 = arith.addf %5, %6 : vector<24x128xf32>
    %cst_8 = arith.constant 0.000000e+00 : f32
    %8 = vector.broadcast %cst_8 : f32 to vector<24x128xf32>
    %9 = arith.maximumf %7, %8 : vector<24x128xf32>
    %10 = vector.extract_strided_slice %9 {offsets = [0, 0], sizes = [16, 128], strides = [1, 1]} : vector<24x128xf32> to vector<16x128xf32>
    %cst_9 = arith.constant dense<0.000000e+00> : vector<128xf32>
    %11 = vector.multi_reduction <add>, %10, %cst_9 [0] : vector<16x128xf32> to vector<128xf32>
    %12 = vector.shape_cast %11 : vector<128xf32> to vector<1x128xf32>
    %cst_10 = arith.constant 6.250000e-02 : f32
    %13 = vector.broadcast %cst_10 : f32 to vector<1x128xf32>
    %14 = arith.mulf %12, %13 : vector<1x128xf32>
    %15 = vector.extract_strided_slice %9 {offsets = [16, 0], sizes = [8, 128], strides = [1, 1]} : vector<24x128xf32> to vector<8x128xf32>
    %cst_11 = arith.constant dense<0.000000e+00> : vector<128xf32>
    %16 = vector.multi_reduction <add>, %15, %cst_11 [0] : vector<8x128xf32> to vector<128xf32>
    %17 = vector.shape_cast %16 : vector<128xf32> to vector<1x128xf32>
    %cst_12 = arith.constant 1.250000e-01 : f32
    %18 = vector.broadcast %cst_12 : f32 to vector<1x128xf32>
    %19 = arith.mulf %17, %18 : vector<1x128xf32>
    %20 = vector.extract_strided_slice %14 {offsets = [0, 0], sizes = [1, 16], strides = [1, 1]} : vector<1x128xf32> to vector<1x16xf32>
    %21 = vector.extract_strided_slice %14 {offsets = [0, 16], sizes = [1, 16], strides = [1, 1]} : vector<1x128xf32> to vector<1x16xf32>
    %22 = vector.extract_strided_slice %14 {offsets = [0, 32], sizes = [1, 16], strides = [1, 1]} : vector<1x128xf32> to vector<1x16xf32>
    %23 = vector.extract_strided_slice %14 {offsets = [0, 48], sizes = [1, 16], strides = [1, 1]} : vector<1x128xf32> to vector<1x16xf32>
    %24 = tpu.concatenate %20, %21, %22, %23 in 0 : vector<1x16xf32>, vector<1x16xf32>, vector<1x16xf32>, vector<1x16xf32> -> vector<4x16xf32>
    %25 = vector.extract_strided_slice %19 {offsets = [0, 64], sizes = [1, 16], strides = [1, 1]} : vector<1x128xf32> to vector<1x16xf32>
    %26 = vector.extract_strided_slice %19 {offsets = [0, 80], sizes = [1, 16], strides = [1, 1]} : vector<1x128xf32> to vector<1x16xf32>
    %27 = vector.extract_strided_slice %19 {offsets = [0, 96], sizes = [1, 16], strides = [1, 1]} : vector<1x128xf32> to vector<1x16xf32>
    %28 = vector.extract_strided_slice %19 {offsets = [0, 112], sizes = [1, 16], strides = [1, 1]} : vector<1x128xf32> to vector<1x16xf32>
    %29 = tpu.concatenate %25, %26, %27, %28 in 0 : vector<1x16xf32>, vector<1x16xf32>, vector<1x16xf32>, vector<1x16xf32> -> vector<4x16xf32>
    %c0_13 = arith.constant 0 : index
    %c0_14 = arith.constant 0 : index
    %30 = vector.load %arg4[%c0_13, %c0_14] : memref<16x32xf32, #tpu.memory_space<vmem>>, vector<16x32xf32>
    %cst_15 = arith.constant dense<0.000000e+00> : vector<4x32xf32>
    %31 = tpu.matmul %29, %30, %cst_15 {dimension_numbers = #tpu.dot_dimension_numbers<[1], [0], [0], [1], [0, 0, 1, 1], [], []>} : vector<4x16xf32>, vector<16x32xf32>, vector<4x32xf32> -> vector<4x32xf32>
    %32 = vector.extract_strided_slice %31 {offsets = [0, 0], sizes = [4, 16], strides = [1, 1]} : vector<4x32xf32> to vector<4x16xf32>
    %33 = vector.extract_strided_slice %31 {offsets = [0, 16], sizes = [4, 16], strides = [1, 1]} : vector<4x32xf32> to vector<4x16xf32>
    %cst_16 = arith.constant dense<0.000000e+00> : vector<4x4xf32>
    %34 = tpu.matmul %32, %33, %cst_16 {dimension_numbers = #tpu.dot_dimension_numbers<[1], [1], [0], [0], [0, 0, 1, 0], [], []>} : vector<4x16xf32>, vector<4x16xf32>, vector<4x4xf32> -> vector<4x4xf32>
    %cst_17 = arith.constant 2.500000e-01 : f32
    %35 = vector.broadcast %cst_17 : f32 to vector<4x4xf32>
    %36 = arith.mulf %34, %35 : vector<4x4xf32>
    %cst_18 = arith.constant dense<0xFF800000> : vector<4xf32>
    %37 = vector.multi_reduction <maximumf>, %36, %cst_18 [1] : vector<4x4xf32> to vector<4xf32>
    %38 = vector.shape_cast %37 : vector<4xf32> to vector<4x1xf32>
    %39 = vector.broadcast %38 : vector<4x1xf32> to vector<4x4xf32>
    %40 = arith.subf %36, %39 : vector<4x4xf32>
    %41 = math.exp %40 : vector<4x4xf32>
    %cst_19 = arith.constant dense<0.000000e+00> : vector<4xf32>
    %42 = vector.multi_reduction <add>, %41, %cst_19 [1] : vector<4x4xf32> to vector<4xf32>
    %43 = vector.shape_cast %42 : vector<4xf32> to vector<4x1xf32>
    %44 = vector.broadcast %43 : vector<4x1xf32> to vector<4x4xf32>
    %45 = arith.divf %41, %44 : vector<4x4xf32>
    %cst_20 = arith.constant dense<0.000000e+00> : vector<4xf32>
    %46 = vector.multi_reduction <add>, %45, %cst_20 [0] : vector<4x4xf32> to vector<4xf32>
    %47 = vector.shape_cast %46 : vector<4xf32> to vector<1x4xf32>
    %cst_21 = arith.constant 2.500000e-01 : f32
    %48 = vector.broadcast %cst_21 : f32 to vector<1x4xf32>
    %49 = arith.mulf %47, %48 : vector<1x4xf32>
    %cst_22 = arith.constant dense<0.000000e+00> : vector<4x32xf32>
    %50 = tpu.matmul %24, %30, %cst_22 {dimension_numbers = #tpu.dot_dimension_numbers<[1], [0], [0], [1], [0, 0, 1, 1], [], []>} : vector<4x16xf32>, vector<16x32xf32>, vector<4x32xf32> -> vector<4x32xf32>
    %51 = vector.extract_strided_slice %50 {offsets = [0, 0], sizes = [4, 16], strides = [1, 1]} : vector<4x32xf32> to vector<4x16xf32>
    %52 = vector.extract_strided_slice %50 {offsets = [0, 16], sizes = [4, 16], strides = [1, 1]} : vector<4x32xf32> to vector<4x16xf32>
    %cst_23 = arith.constant dense<0.000000e+00> : vector<4x4xf32>
    %53 = tpu.matmul %51, %52, %cst_23 {dimension_numbers = #tpu.dot_dimension_numbers<[1], [1], [0], [0], [0, 0, 1, 0], [], []>} : vector<4x16xf32>, vector<4x16xf32>, vector<4x4xf32> -> vector<4x4xf32>
    %cst_24 = arith.constant 2.500000e-01 : f32
    %54 = vector.broadcast %cst_24 : f32 to vector<4x4xf32>
    %55 = arith.mulf %53, %54 : vector<4x4xf32>
    %cst_25 = arith.constant dense<0xFF800000> : vector<4xf32>
    %56 = vector.multi_reduction <maximumf>, %55, %cst_25 [1] : vector<4x4xf32> to vector<4xf32>
    %57 = vector.shape_cast %56 : vector<4xf32> to vector<4x1xf32>
    %58 = vector.broadcast %57 : vector<4x1xf32> to vector<4x4xf32>
    %59 = arith.subf %55, %58 : vector<4x4xf32>
    %60 = math.exp %59 : vector<4x4xf32>
    %cst_26 = arith.constant dense<0.000000e+00> : vector<4xf32>
    %61 = vector.multi_reduction <add>, %60, %cst_26 [1] : vector<4x4xf32> to vector<4xf32>
    %62 = vector.shape_cast %61 : vector<4xf32> to vector<4x1xf32>
    %63 = vector.broadcast %62 : vector<4x1xf32> to vector<4x4xf32>
    %64 = arith.divf %60, %63 : vector<4x4xf32>
    %cst_27 = arith.constant dense<0.000000e+00> : vector<4xf32>
    %65 = vector.multi_reduction <add>, %64, %cst_27 [0] : vector<4x4xf32> to vector<4xf32>
    %66 = vector.shape_cast %65 : vector<4xf32> to vector<1x4xf32>
    %cst_28 = arith.constant 2.500000e-01 : f32
    %67 = vector.broadcast %cst_28 : f32 to vector<1x4xf32>
    %68 = arith.mulf %66, %67 : vector<1x4xf32>
    %c0_29 = arith.constant 0 : index
    %c0_30 = arith.constant 0 : index
    %c0_31 = arith.constant 0 : index
    %69 = vector.load %arg5[%c0_29, %c0_30, %c0_31] : memref<2x4x144xf32, #tpu.memory_space<vmem>>, vector<1x4x144xf32>
    %70 = vector.shape_cast %69 : vector<1x4x144xf32> to vector<4x144xf32>
    %cst_32 = arith.constant dense<0.000000e+00> : vector<1x144xf32>
    %71 = tpu.matmul %49, %70, %cst_32 {dimension_numbers = #tpu.dot_dimension_numbers<[1], [0], [0], [1], [0, 0, 1, 1], [], []>} : vector<1x4xf32>, vector<4x144xf32>, vector<1x144xf32> -> vector<1x144xf32>
    %c1 = arith.constant 1 : index
    %c0_33 = arith.constant 0 : index
    %c0_34 = arith.constant 0 : index
    %72 = vector.load %arg5[%c1, %c0_33, %c0_34] : memref<2x4x144xf32, #tpu.memory_space<vmem>>, vector<1x4x144xf32>
    %73 = vector.shape_cast %72 : vector<1x4x144xf32> to vector<4x144xf32>
    %cst_35 = arith.constant dense<0.000000e+00> : vector<1x144xf32>
    %74 = tpu.matmul %68, %73, %cst_35 {dimension_numbers = #tpu.dot_dimension_numbers<[1], [0], [0], [1], [0, 0, 1, 1], [], []>} : vector<1x4xf32>, vector<4x144xf32>, vector<1x144xf32> -> vector<1x144xf32>
    %75 = vector.extract_strided_slice %71 {offsets = [0, 0], sizes = [1, 128], strides = [1, 1]} : vector<1x144xf32> to vector<1x128xf32>
    %76 = vector.extract_strided_slice %71 {offsets = [0, 128], sizes = [1, 16], strides = [1, 1]} : vector<1x144xf32> to vector<1x16xf32>
    %77 = vector.extract_strided_slice %74 {offsets = [0, 0], sizes = [1, 128], strides = [1, 1]} : vector<1x144xf32> to vector<1x128xf32>
    %78 = vector.extract_strided_slice %74 {offsets = [0, 128], sizes = [1, 16], strides = [1, 1]} : vector<1x144xf32> to vector<1x16xf32>
    %79 = vector.extract_strided_slice %9 {offsets = [0, 0], sizes = [16, 128], strides = [1, 1]} : vector<24x128xf32> to vector<16x128xf32>
    %80 = vector.broadcast %75 : vector<1x128xf32> to vector<16x128xf32>
    %81 = arith.mulf %79, %80 : vector<16x128xf32>
    %82 = arith.truncf %81 : vector<16x128xf32> to vector<16x128xbf16>
    %c0_36 = arith.constant 0 : index
    %c0_37 = arith.constant 0 : index
    %c0_38 = arith.constant 0 : index
    %83 = vector.load %arg6[%c0_36, %c0_37, %c0_38] : memref<2x128x16xbf16, #tpu.memory_space<vmem>>, vector<1x128x16xbf16>
    %84 = vector.shape_cast %83 : vector<1x128x16xbf16> to vector<128x16xbf16>
    %cst_39 = arith.constant dense<0.000000e+00> : vector<16x16xf32>
    %85 = tpu.matmul %82, %84, %cst_39 {dimension_numbers = #tpu.dot_dimension_numbers<[1], [0], [0], [1], [0, 0, 1, 1], [], []>} : vector<16x128xbf16>, vector<128x16xbf16>, vector<16x16xf32> -> vector<16x16xf32>
    %86 = vector.broadcast %76 : vector<1x16xf32> to vector<16x16xf32>
    %87 = arith.addf %85, %86 : vector<16x16xf32>
    %88 = vector.extract_strided_slice %9 {offsets = [16, 0], sizes = [8, 128], strides = [1, 1]} : vector<24x128xf32> to vector<8x128xf32>
    %89 = vector.broadcast %77 : vector<1x128xf32> to vector<8x128xf32>
    %90 = arith.mulf %88, %89 : vector<8x128xf32>
    %91 = arith.truncf %90 : vector<8x128xf32> to vector<8x128xbf16>
    %c1_40 = arith.constant 1 : index
    %c0_41 = arith.constant 0 : index
    %c0_42 = arith.constant 0 : index
    %92 = vector.load %arg6[%c1_40, %c0_41, %c0_42] : memref<2x128x16xbf16, #tpu.memory_space<vmem>>, vector<1x128x16xbf16>
    %93 = vector.shape_cast %92 : vector<1x128x16xbf16> to vector<128x16xbf16>
    %cst_43 = arith.constant dense<0.000000e+00> : vector<8x16xf32>
    %94 = tpu.matmul %91, %93, %cst_43 {dimension_numbers = #tpu.dot_dimension_numbers<[1], [0], [0], [1], [0, 0, 1, 1], [], []>} : vector<8x128xbf16>, vector<128x16xbf16>, vector<8x16xf32> -> vector<8x16xf32>
    %95 = vector.broadcast %78 : vector<1x16xf32> to vector<8x16xf32>
    %96 = arith.addf %94, %95 : vector<8x16xf32>
    %c0_44 = arith.constant 0 : index
    %c0_45 = arith.constant 0 : index
    %97 = vector.load %arg7[%c0_44, %c0_45] : memref<24x16xf32, #tpu.memory_space<vmem>>, vector<16x16xf32>
    tpu.vector_store %arg7[%c0_44, %c0_45], %87 {strides = array<i32>} : memref<24x16xf32, #tpu.memory_space<vmem>>, vector<16x16xf32>,
    %c16 = arith.constant 16 : index
    %c0_46 = arith.constant 0 : index
    %98 = vector.load %arg7[%c16, %c0_46] : memref<24x16xf32, #tpu.memory_space<vmem>>, vector<8x16xf32>
    tpu.vector_store %arg7[%c16, %c0_46], %96 {strides = array<i32>} : memref<24x16xf32, #tpu.memory_space<vmem>>, vector<8x16xf32>,
    return
  }
}

</mosaic_0001>

<bundles_post_ra>
// kernel: st_block_forward.1
= control target key start
LH: loop header
LB: loop body
LE: loop exit
PB: predicated region body
PF: predicated region fallthrough
CT: control target
= control target key end

     0   :  { %vm101_vm0 = vcmask 523264   ;;  %vm179_vm1 = vcmask 785408   ;;  %s893_s28 = smov 80   ;;  %s894_s29 = smov 96   ;;  %vm232_vm2 = vcmask 1040384   ;;  %vm234_vm3 = vcmask 1041408   ;;  %s1102_s1 = inlined_call_operand.vmem [shape: bf16[64,128], index: 1, kind: input, shape index: {}]   ;;  %s1103_s0 = inlined_call_operand.vmem [shape: bf16[96,64], index: 0, kind: input, shape index: {}]   ;;  %s1104_s2 = inlined_call_operand.vmem [shape: bf16[24,96], index: 2, kind: input, shape index: {}]   ;;  %s1105_s3 = inlined_call_operand.vmem [shape: f32[24,128], index: 3, kind: input, shape index: {}]   ;;  %s1106_s4 = inlined_call_operand.vmem [shape: f32[16,32], index: 4, kind: input, shape index: {}]   ;;  %s1107_s5 = inlined_call_operand.vmem [shape: f32[2,4,144], index: 5, kind: input, shape index: {}]   ;;  %s1108_s6 = inlined_call_operand.vmem [shape: bf16[2,128,16], index: 6, kind: input, shape index: {}]   ;;  %s1109_s7 = inlined_call_operand.vmem [shape: f32[24,16], index: 7, kind: output, shape index: {}]  }
   0x1   :  { %v858_v0 = vld [vmem:[%s1102_s1 + $0x18] sm:$0xff]  ;;  %v857_v1 = vld [vmem:[%s1102_s1 + $0x10] sm:$0xff]  ;;  %v856_v2 = vld [vmem:[%s1102_s1 + $0x8] sm:$0xff]  ;;  %vm236_vm4 = vcmask 1042432   ;;  %s895_s11 = smov 64   ;;  %vm256_vm5 = vcmask 130048  }
   0x2   :  { %124 = vmatpush.bf16.msra.mxu0 %v858_v0  ;;  %876 = vmatpush.bf16.msra.mxu3 %v858_v0  ;;  %v855_v3 = vld [vmem:[%s1102_s1] sm:$0xff]  ;;  %v850_v6 = vld [vmem:[%s1103_s0 + $0x8] sm:$0xff]  ;;  %v851_v8 = vld [vmem:[%s1103_s0 + $0x10] sm:$0xff]  ;;  %vm307_vm6 = vcmask 27648   ;;  %vm432_vm7 = vcmask 1043456  }
   0x3   :  { %v849_v4 = vld [vmem:[%s1103_s0] sm:$0xff]  ;;  %v854_v7 = vld [vmem:[%s1103_s0 + $0x28] sm:$0xff]  ;;  %v852_v9 = vld [vmem:[%s1103_s0 + $0x18] sm:$0xff] }
   0x4   :  { %v853_v5 = vld [vmem:[%s1103_s0 + $0x20] sm:$0xff]  ;;  %v161_v29 = vld [vmem:[%s1104_s2 + $0x8] sm:$0xf]  ;;  %v170_v41 = vld [vmem:[%s1105_s3 + $0x10] sm:$0xff] }
   0x5   :  { %v859_v28 = vld [vmem:[%s1104_s2] sm:$0xff]  ;;  %v176_v30 = vunpack.c.l.b16 %v161_v29  ;;  %v169_v34 = vld [vmem:[%s1105_s3 + $0x8] sm:$0xff] }
   0x6   :  { %125 = vmatpush.bf16.msra.mxu0 %v857_v1  ;;  %877 = vmatpush.bf16.msra.mxu3 %v857_v1  ;;  %v168_v33 = vld [vmem:[%s1105_s3] sm:$0xff]  ;;  %s892_s3 = smov 112   ;;  %v252_v0 = vld [vmem:[%s1106_s4 + $0x8] sm:$0xff] }
   0x7   :  { %v178_v31 = vpack.c.b16 %v176_v30, %v176_v30  ;;  %v251_v1 = vld [vmem:[%s1106_s4] sm:$0xff]  ;;  %273 = vmatpush.msra.mxu2 %v252_v0 }
   0x9   :  { %274 = vmatpush.msra.mxu2 %v251_v1 }
   0xa   :  { %126 = vmatpush.bf16.msra.mxu0 %v856_v2  ;;  %878 = vmatpush.bf16.msra.mxu3 %v856_v2 }
   0xb   :  { %357 = vmatpush.msrb.mxu2 %v252_v0 }
   0xd   :  { %358 = vmatpush.msrb.mxu2 %v251_v1 }
   0xe   :  { %127 = vmatpush.bf16.msra.mxu0 %v855_v3  ;;  %879 = vmatpush.bf16.msra.mxu3 %v855_v3 }
  0x11   :  { %742 = vmatmul.msk.bf16.vlgmr.msra.gmra.mxu0 %vm101_vm0, %v849_v4  ;;  %746 = vmatmul.msk.bf16.vlgmr.msra.gmra.mxu3 %vm101_vm0, %v853_v5 }
  0x21   :  { %743 = vmatmul.msk.bf16.gmra.mxu0 %vm101_vm0, %v850_v6  ;;  %747 = vmatmul.msk.bf16.gmra.mxu3 %vm101_vm0, %v854_v7 }
  0x31   :  { %744 = vmatmul.msk.bf16.gmra.mxu0 %vm101_vm0, %v851_v8 }
  0x41   :  { %745 = vmatmul.msk.bf16.gmra.mxu0 %vm101_vm0, %v852_v9  ;;  %vm428_vm0 = vcmask 31744  }
  0x8e   :  { %v129_v10 = vpop.f32.mrf.mxu0 }
  0x94   :  { %v149_v11 = vpop.f32.mrf.mxu3 }
  0x96   :  { %v131_v12 = vpop.f32.mrf.mxu0 }
  0x97   :  { %v162_v27 = vpack.c.bf16 %v131_v12, %v129_v10 }
  0x9c   :  { %v151_v13 = vpop.f32.mrf.mxu3 }
  0x9d   :  { %v166_v20 = vpack.c.bf16 %v151_v13, %v149_v11 }
  0x9e   :  { %v134_v14 = vpop.f32.mrf.mxu0 }
  0xa4   :  { %v154_v15 = vpop.f32.mrf.mxu3 }
  0xa6   :  { %v136_v16 = vpop.f32.mrf.mxu0 }
  0xa7   :  { %v163_v26 = vpack.c.bf16 %v136_v16, %v134_v14 }
  0xac   :  { %v156_v17 = vpop.f32.mrf.mxu3 }
  0xad   :  { %v167_v18 = vpack.c.bf16 %v156_v17, %v154_v15 }
  0xae   :  { %v139_v19 = vpop.f32.mrf.mxu0 }
  0xaf   :  { %188 = vmatpush.bf16.msra.mxu1 %v167_v18 }
  0xb3   :  { %189 = vmatpush.bf16.msra.mxu1 %v166_v20 }
  0xb6   :  { %v141_v21 = vpop.f32.mrf.mxu0 }
  0xb7   :  { %v164_v25 = vpack.c.bf16 %v141_v21, %v139_v19 }
  0xbe   :  { %v144_v22 = vpop.f32.mrf.mxu0 }
  0xc6   :  { %v146_v23 = vpop.f32.mrf.mxu0 }
  0xc7   :  { %v165_v24 = vpack.c.bf16 %v146_v23, %v144_v22 }
  0xc9   :  { %190 = vmatpush.bf16.msra.mxu1 %v165_v24 }
  0xcd   :  { %191 = vmatpush.bf16.msra.mxu1 %v164_v25 }
  0xd1   :  { %192 = vmatpush.bf16.msra.mxu1 %v163_v26 }
  0xd5   :  { %193 = vmatpush.bf16.msra.mxu1 %v162_v27 }
  0xd8   :  { %752 = vmatmul.msk.bf16.vlgmr.msra.gmra.mxu1 %vm179_vm1, %v859_v28 }
  0xe8   :  { %753 = vmatmul.msk.bf16.gmra.mxu1 %vm179_vm1, %v178_v31  ;;  %v423_v31 = vld [vmem:[%s1107_s5] sm:$0xff] }
  0xe9   :  { %425 = vst [vmem:[#allocation1] ss:$2 sm:$0xff] %v423_v31  ;;  %v870_v31 = vld [vmem:[%s1108_s6 + $0x50] sm:$0xff] }
 0x155   :  { %v195_v32 = vpop.f32.mrf.mxu1 }
 0x156   :  { %v978_v35 = vadd.f32 %v195_v32, %v168_v33  ;;  %v426_v33 = vld.sshfl [vmem:[#allocation1] sm:$0xff pattern:$0x75316420] }
 0x158   :  { %v204_v38 = vmax.f32 %v978_v35, 0.0 }
 0x15d   :  { %v197_v36 = vpop.f32.mrf.mxu1 }
 0x15e   :  { %v980_v37 = vadd.f32 %v197_v36, %v169_v34  ;;  %v427_v34 = vld.sshfl [vmem:[#allocation1 + $0x8] sm:$0xff pattern:$0x75316420] }
 0x15f   :  { %v764_v36 = vld [vmem:[%s1107_s5 + $0x8] sm:$0xff] }
 0x160   :  { %v205_v39 = vmax.f32 %v980_v37, 0.0  ;;  %480 = vst [vmem:[#allocation1] ss:$2 sm:$0xff] %v764_v36 }
 0x162   :  { %v207_v40 = vadd.f32 %v205_v39, %v204_v38 }
 0x164   :  { %v208_v42 = vrot.slane %v207_v40, 4 }
 0x165   :  { %v200_v43 = vpop.f32.mrf.mxu1 }
 0x166   :  { %v209_v44 = vadd.f32 %v208_v42, %v207_v40  ;;  %v201_v45 = vadd.f32 %v200_v43, %v170_v41 }
 0x168   :  { %v210_v46 = vrot.slane %v209_v44, 2  ;;  %v991_v47 = vmax.f32 %v201_v45, 0.0 }
 0x16a   :  { %v211_v48 = vadd.f32 %v210_v46, %v209_v44  ;;  %v215_v49 = vrot.slane %v991_v47, 4  ;;  %v481_v44 = vld.sshfl [vmem:[#allocation1] sm:$0xff pattern:$0x75316420] }
 0x16b   :  { %v482_v46 = vld.sshfl [vmem:[#allocation1 + $0x8] sm:$0xff pattern:$0x75316420] }
 0x16c   :  { %v212_v50 = vrot.slane %v211_v48, 1  ;;  %v216_v51 = vadd.f32 %v215_v49, %v991_v47 }
 0x16d   :  { %v202_v52 = vpop.f32.mrf.mxu1 }
 0x16e   :  { %v217_v53 = vrot.slane %v216_v51, 2  ;;  %v213_v54 = vadd.f32 %v212_v50, %v211_v48  ;;  %v867_v48 = vld [vmem:[%s1108_s6 + $0x38] sm:$0xff] }
 0x16f   :  { %599 = vmatpush.bf16.msrb.mxu1 %v867_v48 }
 0x170   :  { %v218_v55 = vadd.f32 %v217_v53, %v216_v51  ;;  %v214_v56 = vmul.f32 0.0625, %v213_v54  ;;  %v866_v51 = vld [vmem:[%s1108_s6 + $0x30] sm:$0xff] }
 0x172   :  { %v219_v57 = vrot.slane %v218_v55, 1  ;;  %223 = vrot.lane.b32.xlu2 %v214_v56, %s892_s3 }
 0x173   :  { %600 = vmatpush.bf16.msrb.mxu1 %v866_v51 }
 0x174   :  { %v220_v58 = vadd.f32 %v219_v57, %v218_v55 }
 0x176   :  { %v221_v59 = vmul.f32 0.125, %v220_v58  ;;  %v865_v58 = vld [vmem:[%s1108_s6 + $0x28] sm:$0xff] }
 0x177   :  { %601 = vmatpush.bf16.msrb.mxu1 %v865_v58 }
 0x178   :  { %245 = vrot.lane.b32.xlu1 %v221_v59, %s893_s28  ;;  %239 = vrot.lane.b32.xlu0 %v221_v59, %s892_s3 }
 0x17a   :  { %226 = vrot.lane.b32.xlu2 %v214_v56, %s894_s29 }
 0x180   :  { %242 = vrot.lane.b32.xlu0 %v221_v59, %s894_s29 }
 0x188   :  { %229 = vrot.lane.b32.xlu0 %v214_v56, %s893_s28 }
 0x1cc   :  { %v224_v60 = vpop.permute.xlu2 %223 }
 0x1cd   :  { %v233_v61 = vsel %vm232_vm2, %v214_v56, %v224_v60 }
 0x1d4   :  { %v227_v62 = vpop.permute.xlu2 %226 }
 0x1d5   :  { %v235_v63 = vsel %vm234_vm3, %v233_v61, %v227_v62 }
 0x1ea   :  { %v240_v2 = vpop.permute.xlu0 %239  ;;  %v246_v5 = vpop.permute.xlu1 %245 }
 0x1eb   :  { %v248_v3 = vsel %vm232_vm2, %v221_v59, %v240_v2  ;;  %v864_v2 = vld [vmem:[%s1108_s6 + $0x20] sm:$0xff] }
 0x1ec   :  { %602 = vmatpush.bf16.msrb.mxu1 %v864_v2 }
 0x1f2   :  { %v243_v4 = vpop.permute.xlu0 %242 }
 0x1f3   :  { %v249_v6 = vsel %vm234_vm3, %v248_v3, %v243_v4 }
 0x1f4   :  { %v250_v7 = vsel %vm236_vm4, %v249_v6, %v246_v5 }
 0x1f5   :  { %254 = vrot.lane.b32.xlu1 %v250_v7, %s895_s11 }
 0x1fa   :  { %v230_v8 = vpop.permute.xlu0 %229 }
 0x1fb   :  { %v237_v9 = vsel %vm236_vm4, %v235_v63, %v230_v8 }
 0x267   :  { %v255_v10 = vpop.permute.xlu1 %254 }
 0x268   :  { %754 = vmatmul.msk.f32.vlgmr.msra.gmra.mxu2 %vm256_vm5, %v255_v10 }
 0x269   :  { %760 = vmatpush.msk.msra.mxu2 %vm432_vm7, %v426_v33  ;;  %v868_v33 = vld [vmem:[%s1108_s6 + $0x40] sm:$0xff] }
 0x270   :  { %757 = vmatmul.msk.f32.vlgmr.msrb.gmra.mxu2 %vm256_vm5, %v237_v9  ;;  %v863_v9 = vld [vmem:[%s1108_s6 + $0x18] sm:$0xff] }
 0x271   :  { %765 = vmatpush.msk.msrb.mxu2 %vm432_vm7, %v481_v44  ;;  %603 = vmatpush.bf16.msrb.mxu1 %v863_v9 }
 0x2eb   :  { %v276_v11 = vpop.f32.mrf.mxu2 }
 0x2ec   :  { %280 = vrot.lane.b32.xlu1 %v276_v11, %s892_s3 }
 0x2f3   :  { %v360_v12 = vpop.f32.mrf.mxu2 }
 0x2f4   :  { %364 = vrot.lane.b32.xlu2 %v360_v12, %s892_s3 }
 0x34e   :  { %v365_v14 = vpop.permute.xlu2 %364 }
 0x35e   :  { %v281_v13 = vpop.permute.xlu1 %280 }
 0x35f   :  { %755 = vmatpush.xpose.msk.msrb.mxu3 %vm256_vm5, %v281_v13 }
 0x362   :  { %756 = vmatmul.msk.f32.vlgmr.msrb.gmra.mxu3 %vm256_vm5, %v276_v11 }
 0x363   :  { %758 = vmatpush.xpose.msk.msra.mxu3 %vm256_vm5, %v365_v14 }
 0x367   :  { %762 = vmatpush.msk.msrb.mxu3 %vm432_vm7, %v427_v34 }
 0x36a   :  { %759 = vmatmul.msk.f32.vlgmr.msra.gmra.mxu3 %vm256_vm5, %v360_v12 }
 0x36b   :  { %767 = vmatpush.msk.msra.mxu3 %vm432_vm7, %v482_v46 }
 0x3e5   :  { %v303_v15 = vpop.f32.mrf.mxu3 }
 0x3e6   :  { %v306_v16 = vmul.f32 0.25, %v303_v15  ;;  %v862_v15 = vld [vmem:[%s1108_s6 + $0x10] sm:$0xff] }
 0x3e7   :  { %604 = vmatpush.bf16.msrb.mxu1 %v862_v15 }
 0x3e8   :  { %v308_v17 = vsel %vm307_vm6, %v306_v16, -inf }
 0x3e9   :  { %309 = vmax.xlane.f32.xlu0 %v308_v17 }
 0x3ed   :  { %v387_v18 = vpop.f32.mrf.mxu3 }
 0x3ee   :  { %v390_v19 = vmul.f32 0.25, %v387_v18  ;;  %v875_v18 = vld [vmem:[%s1108_s6 + $0x78] sm:$0xff] }
 0x3f0   :  { %v391_v20 = vsel %vm307_vm6, %v390_v19, -inf }
 0x3f1   :  { %392 = vmax.xlane.f32.xlu1 %v391_v20 }
 0x45c   :  { %v310_v21 = vpop.xlane.xlu0 %309 }
 0x45d   :  { %v311_v22 = vsub.f32 %v306_v16, %v310_v21 }
 0x45f   :  { %v312_v23 = vmul.f32 1.442695, %v311_v22  ;;  %v874_v22 = vld [vmem:[%s1108_s6 + $0x70] sm:$0xff] }
 0x461   :  { %884 = vpow2.f32 %v312_v23 }
 0x464   :  { %v393_v24 = vpop.xlane.xlu1 %392 }
 0x465   :  { %v394_v25 = vsub.f32 %v390_v19, %v393_v24 }
 0x467   :  { %v885_v26 = vpop.eup %884  ;;  %v395_v27 = vmul.f32 1.442695, %v394_v25  ;;  %v873_v25 = vld [vmem:[%s1108_s6 + $0x68] sm:$0xff] }
 0x468   :  { %v314_v28 = vsel %vm307_vm6, %v885_v26, 0.0 }
 0x469   :  { %886 = vpow2.f32 %v395_v27  ;;  %315 = vadd.xlane.f32.xlu2 %v314_v28  ;;  %v872_v27 = vld [vmem:[%s1108_s6 + $0x60] sm:$0xff]  ;;  %v861_v28 = vld [vmem:[%s1108_s6 + $0x8] sm:$0xff] }
 0x46a   :  { %605 = vmatpush.bf16.msrb.mxu1 %v861_v28 }
 0x46f   :  { %v1016_v29 = vpop.eup %886 }
 0x470   :  { %v397_v30 = vsel %vm307_vm6, %v1016_v29, 0.0 }
 0x471   :  { %398 = vadd.xlane.f32.xlu2 %v397_v30  ;;  %v860_v30 = vld [vmem:[%s1108_s6] sm:$0xff] }
 0x472   :  { %606 = vmatpush.bf16.msrb.mxu1 %v860_v30 }
 0x4dc   :  { %v316_v32 = vpop.xlane.xlu2 %315 }
 0x4dd   :  { %888 = vrcp.f32 %v316_v32  ;;  %v328_v45 = vand.u32 2147483648, %v316_v32  ;;  %v326_v50 = vand.u32 2147483647, %v316_v32  ;;  %vm322_vm9 = vweird.f32 %v316_v32 }
 0x4df   :  { %v329_v54 = vor.u32 1.1754944e-38, %v328_v45  ;;  %vm327_vm11 = vcmp.eq.f32.partialorder %v326_v50, 8.507059e+37 }
 0x4e3   :  { %v889_v40 = vpop.eup %888 }
 0x4e4   :  { %v318_v41 = vmul.f32 %v889_v40, %v316_v32  ;;  %v399_v42 = vpop.xlane.xlu2 %398  ;;  %vm323_vm8 = vweird.f32 %v889_v40  ;;  %v869_v32 = vld [vmem:[%s1108_s6 + $0x48] sm:$0xff] }
 0x4e5   :  { %890 = vrcp.f32 %v399_v42  ;;  %vm324_vm10 = vmor %vm322_vm9, %vm323_vm8  ;;  %v411_v61 = vand.u32 2147483648, %v399_v42  ;;  %v409_v0 = vand.u32 2147483647, %v399_v42  ;;  %vm405_vm13 = vweird.f32 %v399_v42 }
 0x4e6   :  { %v319_v43 = vsub.f32 1.0, %v318_v41 }
 0x4e7   :  { %v412_v5 = vor.u32 1.1754944e-38, %v411_v61  ;;  %vm410_vm15 = vcmp.eq.f32.partialorder %v409_v0, 8.507059e+37 }
 0x4e8   :  { %v320_v49 = vmul.f32 %v889_v40, %v319_v43 }
 0x4ea   :  { %v321_v52 = vadd.f32 %v889_v40, %v320_v49 }
 0x4eb   :  { %v891_v53 = vpop.eup %890 }
 0x4ec   :  { %v325_v55 = vsel %vm324_vm10, %v889_v40, %v321_v52  ;;  %v401_v56 = vmul.f32 %v891_v53, %v399_v42  ;;  %vm406_vm12 = vweird.f32 %v891_v53 }
 0x4ed   :  { %v330_v57 = vsel %vm327_vm11, %v329_v54, %v325_v55  ;;  %vm407_vm14 = vmor %vm405_vm13, %vm406_vm12 }
 0x4ee   :  { %v331_v59 = vmul.f32 %v885_v26, %v330_v57  ;;  %v402_v60 = vsub.f32 1.0, %v401_v56 }
 0x4f0   :  { %v332_v62 = vsel %vm307_vm6, %v331_v59, 0.0  ;;  %v403_v63 = vmul.f32 %v891_v53, %v402_v60 }
 0x4f1   :  { %v333_v1 = vrot.slane %v332_v62, 4 }
 0x4f2   :  { %v404_v3 = vadd.f32 %v891_v53, %v403_v63 }
 0x4f3   :  { %v334_v4 = vadd.f32 %v333_v1, %v332_v62 }
 0x4f4   :  { %v408_v6 = vsel %vm407_vm14, %v891_v53, %v404_v3 }
 0x4f5   :  { %v413_v7 = vsel %vm410_vm15, %v412_v5, %v408_v6  ;;  %v335_v8 = vrot.slane %v334_v4, 2 }
 0x4f6   :  { %v414_v10 = vmul.f32 %v1016_v29, %v413_v7  ;;  %v871_v29 = vld [vmem:[%s1108_s6 + $0x58] sm:$0xff] }
 0x4f7   :  { %v336_v11 = vadd.f32 %v335_v8, %v334_v4 }
 0x4f8   :  { %v415_v12 = vsel %vm307_vm6, %v414_v10, 0.0 }
 0x4f9   :  { %v416_v13 = vrot.slane %v415_v12, 4  ;;  %v337_v14 = vrot.slane %v336_v11, 1 }
 0x4fb   :  { %v417_v16 = vadd.f32 %v416_v13, %v415_v12  ;;  %v338_v17 = vadd.f32 %v337_v14, %v336_v11 }
 0x4fd   :  { %v418_v19 = vrot.slane %v417_v16, 2  ;;  %v339_v20 = vmul.f32 0.25, %v338_v17 }
 0x4ff   :  { %761 = vmatmul.msk.f32.vlgmr.msra.gmra.mxu2 %vm428_vm0, %v339_v20  ;;  %763 = vmatmul.msk.f32.vlgmr.msrb.gmra.mxu3 %vm428_vm0, %v339_v20  ;;  %v419_v21 = vadd.f32 %v418_v19, %v417_v16 }
 0x500   :  { %682 = vmatpush.bf16.msra.mxu2 %v875_v18 }
 0x501   :  { %v420_v23 = vrot.slane %v419_v21, 1 }
 0x503   :  { %v421_v24 = vadd.f32 %v420_v23, %v419_v21 }
 0x504   :  { %683 = vmatpush.bf16.msra.mxu2 %v874_v22 }
 0x505   :  { %v422_v26 = vmul.f32 0.25, %v421_v24 }
 0x507   :  { %766 = vmatmul.msk.f32.vlgmr.msrb.gmra.mxu2 %vm428_vm0, %v422_v26  ;;  %768 = vmatmul.msk.f32.vlgmr.msra.gmra.mxu3 %vm428_vm0, %v422_v26 }
 0x508   :  { %684 = vmatpush.bf16.msra.mxu2 %v873_v25 }
 0x50c   :  { %685 = vmatpush.bf16.msra.mxu2 %v872_v27 }
 0x510   :  { %686 = vmatpush.bf16.msra.mxu2 %v871_v29 }
 0x514   :  { %687 = vmatpush.bf16.msra.mxu2 %v870_v31 }
 0x518   :  { %688 = vmatpush.bf16.msra.mxu2 %v869_v32 }
 0x51c   :  { %689 = vmatpush.bf16.msra.mxu2 %v868_v33 }
 0x582   :  { %v454_v34 = vpop.f32.mrf.mxu2  ;;  %v474_v48 = vpop.f32.mrf.mxu3 }
 0x583   :  { %v530_v36 = vperm.slane %v454_v34, 0  ;;  %v550_v49 = vperm.slane %v474_v48, 0 }
 0x585   :  { %v531_v40 = vmul.f32 %v530_v36, %v204_v38  ;;  %v532_v41 = vmul.f32 %v530_v36, %v205_v39 }
 0x587   :  { %v533_v42 = vpack.c.bf16 %v532_v41, %v531_v40 }
 0x589   :  { %607 = vmatmul.bf16.vlgmr.msrb.gmra.mxu1 %v533_v42 }
 0x58a   :  { %v507_v43 = vpop.f32.mrf.mxu2  ;;  %v527_v38 = vpop.f32.mrf.mxu3 }
 0x58b   :  { %v613_v44 = vperm.slane %v507_v43, 0  ;;  %v633_v39 = vperm.slane %v527_v38, 0 }
 0x58d   :  { %v614_v45 = vmul.f32 %v613_v44, %v991_v47 }
 0x58f   :  { %v615_v46 = vpack.c.bf16 %v614_v45, %v614_v45 }
 0x591   :  { %690 = vmatmul.bf16.vlgmr.msra.gmra.mxu2 %v615_v46 }
 0x606   :  { %v608_v50 = vpop.f32.mrf.mxu1 }
 0x607   :  { %v609_v51 = vadd.f32 %v608_v50, %v550_v49 }
 0x609   :  { %695 = vst.msk [vmem:[%s1109_s7] sm:$0xff] %vm256_vm5, %v609_v51 }
 0x60e   :  { %v610_v35 = vpop.f32.mrf.mxu1 }
 0x60f   :  { %v611_v37 = vadd.f32 %v610_v35, %v550_v49 }
 0x611   :  { %696 = vst.msk [vmem:[%s1109_s7 + $0x8] sm:$0xff] %vm256_vm5, %v611_v37 }
 0x614   :  { %v691_v47 = vpop.f32.mrf.mxu2 }
 0x615   :  { %v692_v52 = vadd.f32 %v691_v47, %v633_v39 }
 0x617   :  { %697 = vst.msk [vmem:[%s1109_s7 + $0x10] sm:$0xff] %vm256_vm5, %v692_v52 }
 0x61c   :  { %v693_v53 = vpop.f32.mrf.mxu2 }

</bundles_post_ra>
